<compile_context>
chip_gen: v7x
topology: tpu7x:2x2x1
jax: 0.10.0
libtpu: 0.0.40
codegen_flags: <defaults>
</compile_context>

<pallas_src>
import functools

import jax
import jax.numpy as jnp
from jax.experimental import pallas as pl
from jax.experimental.pallas import tpu as pltpu


def _cdiv(a, b):
    return (a + b - 1) // b


def _round_up(v, m):
    return _cdiv(v, m) * m


def _tcl_kernel(x_ref, ct_ref, c2h_ref, lab_ref, out_ref, *,
                margin, batch_size, tile_b):
    i = pl.program_id(0)

    x = x_ref[...]                 # (tb, Dp)  input dtype (fed to MXU as-is)
    ct = ct_ref[...]               # (Dp, Cp)  input dtype, pre-transposed centers
    labels = lab_ref[...]          # (tb, 1)   int32
    c2h = c2h_ref[...]             # (1, Cp)   f32: 0.5*||c||^2 (+1e30 on pad lanes)

    # Per-sample half squared norms (small, f32 for accuracy).
    xf = x.astype(jnp.float32)
    x2h = 0.5 * jnp.sum(xf * xf, axis=1, keepdims=True)               # (tb, 1)

    # x @ centers^T on the MXU (centers already transposed in the wrapper),
    # f32 accumulator, operands kept in their input dtype.
    xc = jax.lax.dot_general(
        x, ct,
        dimension_numbers=(((1,), (0,)), ((), ())),
        preferred_element_type=jnp.float32)                            # (tb, Cp)

    # Half squared distances; clamp guards against cancellation going negative.
    # Padded class lanes carry the +1e30 bias folded into c2h, so they can never
    # win the neg-min below (no per-tile pad mask needed).
    dist = jnp.maximum(x2h + c2h - xc, 0.0)                            # (tb, Cp)

    cls = jax.lax.broadcasted_iota(jnp.int32, dist.shape, 1)           # (tb, Cp)
    is_pos = cls == labels                                             # own class

    # pos = dist[i, labels[i]]   (labels assumed in [0, num_classes))
    pos = jnp.sum(jnp.where(is_pos, dist, 0.0), axis=1, keepdims=True)      # (tb,1)
    neg = jnp.min(jnp.where(is_pos, jnp.float32(1e30), dist),
                  axis=1, keepdims=True)                                    # (tb,1)

    # V2 loss: softplus(pos + margin - neg), numerically stable form.
    z = pos + margin - neg
    per_sample = jnp.maximum(z, 0.0) + jnp.log1p(jnp.exp(-jnp.abs(z)))

    # Mask rows that are batch padding.
    row = i * tile_b + jax.lax.broadcasted_iota(jnp.int32, per_sample.shape, 0)
    per_sample = jnp.where(row < batch_size, per_sample, 0.0)

    # One scalar partial per batch tile, written to SMEM (no masked VMEM store).
    out_ref[0, 0] = jnp.sum(per_sample)


def _choose_batch_tile(B, tile_b):
    """Sublane-aligned batch tile that (a) bounds padding to < one tile and
    (b) gives >= 2 grid steps when the batch can be split (v7x megacore)."""
    nt = max(1, _cdiv(B, max(int(tile_b), 8)))
    if nt < 2 and B > 8:
        nt = 2                      # let dimension_semantics=("parallel",) use both TCs
    tb = _round_up(_cdiv(B, nt), 8)
    Bp = _round_up(B, tb)
    return tb, Bp, Bp // tb


def triplet_center_loss(x, centers, labels, margin=5.0, tile_b=512,
                        vmem_limit_bytes=48 * 1024 * 1024):
    """x: (B, D), centers: (C, D), labels: (B,) int -> scalar loss.

    Dtype policy: x / centers are streamed to the MXU in their input dtype.
    For typical class counts the kernel is HBM-bound on streaming x, so pass
    bf16 end-to-end from the producer when precision allows; do not upcast here.
    """
    B, D = x.shape
    C, Dc = centers.shape
    assert D == Dc
    assert x.dtype == centers.dtype

    # Lane / MXU alignment: classes (output lane axis) and features (MXU K axis)
    # padded to multiples of 128.  Zero padding preserves norms and dot products.
    Cp = _round_up(C, 128)
    Dp = _round_up(D, 128)
    centers_p = jnp.pad(centers, ((0, Cp - C), (0, Dp - D)))

    # Loop-invariant operands, prepared once in the wrapper:
    #  * centers pre-transposed to (Dp, Cp) -> the in-kernel dot needs no relayout,
    #  * half-norm row 0.5*||c||^2 with a large finite bias on padded class lanes
    #    (folds the pad mask into data; 1e30 loses every min yet stays finite).
    centers_t = jnp.transpose(centers_p)                               # (Dp, Cp)
    c2h = 0.5 * jnp.sum(jnp.square(centers_p.astype(jnp.float32)), axis=1)
    c2h = (c2h + jnp.where(jnp.arange(Cp) < C, 0.0, 1e30)).astype(jnp.float32)
    c2h = c2h[None, :]                                                 # (1, Cp)

    # Batch tiling: bound padding to < one tile, keep >= 2 tiles when splittable.
    tb, Bp, num_tiles = _choose_batch_tile(B, tile_b)
    x_p = jnp.pad(x, ((0, Bp - B), (0, Dp - D)))
    labels2d = jnp.pad(labels.astype(jnp.int32), (0, Bp - B)).reshape(Bp, 1)

    kernel = functools.partial(
        _tcl_kernel, margin=float(margin), batch_size=B, tile_b=tb)

    itemsize = jnp.dtype(x.dtype).itemsize
    cost = pl.CostEstimate(
        flops=int(2 * Bp * Cp * Dp + 2 * Bp * Dp),
        transcendentals=int(2 * Bp),
        bytes_accessed=int((Bp * Dp + Dp * Cp) * itemsize + Cp * 4 + Bp * 4
                           + num_tiles * 4),
    )

    def _call(invariant_mode):
        return pl.pallas_call(
            kernel,
            out_shape=jax.ShapeDtypeStruct((num_tiles, 1), jnp.float32),
            grid=(num_tiles,),
            in_specs=[
                # x tile: streamed, double-buffered by the default pipeline.
                pl.BlockSpec((tb, Dp), lambda i: (i, 0)),
                # Centers (pre-transposed) + half-norm row: constant index_map
                # (fetched once); single-buffered to free VMEM for bigger x tiles.
                pl.BlockSpec((Dp, Cp), lambda i: (0, 0),
                             pipeline_mode=invariant_mode),
                pl.BlockSpec((1, Cp), lambda i: (0, 0),
                             pipeline_mode=invariant_mode),
                # labels tile.
                pl.BlockSpec((tb, 1), lambda i: (i, 0)),
            ],
            out_specs=pl.BlockSpec((1, 1), lambda i: (i, 0),
                                   memory_space=pltpu.MemorySpace.SMEM),
            compiler_params=pltpu.CompilerParams(
                dimension_semantics=("parallel",),   # batch tiles independent
                vmem_limit_bytes=int(vmem_limit_bytes),
            ),
            cost_estimate=cost,
        )(x_p, centers_t, c2h, labels2d)

    try:
        partials = _call(pl.Buffered(1))
    except Exception:
        # TODO(synk): this jax build rejects pl.Buffered(1) on a pallas_call
        # BlockSpec; fall back to default double buffering (correctness is
        # unaffected, only the resident-centers VMEM footprint doubles).
        partials = _call(None)

    return jnp.sum(partials) / B


def _reference_loss(x, centers, labels, margin=5.0):
    """Pure-JAX mirror of the PyTorch V2 loop (softplus hinge), for verification."""
    B = x.shape[0]
    C = centers.shape[0]
    diff = x[:, None, :].astype(jnp.float32) - centers[None, :, :].astype(jnp.float32)
    d = 0.5 * jnp.sum(diff * diff, axis=-1)                    # (B, C)
    pos = d[jnp.arange(B), labels]                             # (B,)
    masked = jnp.where(jnp.arange(C)[None, :] == labels[:, None],
                       jnp.finfo(jnp.float32).max, d)
    neg = jnp.min(masked, axis=1)                              # (B,)
    return jnp.sum(jax.nn.softplus(pos + margin - neg)) / B


if __name__ == "__main__":
    margin = 5.0
    key = jax.random.PRNGKey(0)
    k1, k2, k3, k4, k5, k6 = jax.random.split(key, 6)

    # Test 1: module-default class count, scaled-down fea_dim, single tile.
    num_classes, fea_dim, batch = 21, 64, 8
    x = jax.random.normal(k1, (batch, fea_dim), dtype=jnp.float32)
    centers = jax.random.normal(k2, (num_classes, fea_dim), dtype=jnp.float32)
    labels = jax.random.randint(k3, (batch,), 0, num_classes, dtype=jnp.int32)

    loss = jax.block_until_ready(
        triplet_center_loss(x, centers, labels, margin=margin))
    ref = _reference_loss(x, centers, labels, margin=margin)
    assert jnp.allclose(loss, ref, rtol=1e-4, atol=1e-3), (loss, ref)

    # Test 2: multi-tile path with batch padding and unaligned fea_dim.
    b2, d2, c2n = 36, 200, 21
    x2 = jax.random.normal(k4, (b2, d2), dtype=jnp.float32)
    centers2 = jax.random.normal(k5, (c2n, d2), dtype=jnp.float32)
    labels2 = jax.random.randint(k6, (b2,), 0, c2n, dtype=jnp.int32)

    loss2 = jax.block_until_ready(
        triplet_center_loss(x2, centers2, labels2, margin=margin, tile_b=16))
    ref2 = _reference_loss(x2, centers2, labels2, margin=margin)
    assert jnp.allclose(loss2, ref2, rtol=1e-4, atol=1e-3), (loss2, ref2)

    print("KERNEL_OK")
</pallas_src>

<mosaic_0001>
module attributes {stable_mosaic.version = 11 : i64} {
  func.func @_tcl_kernel(%arg0: i32, %arg1: memref<8x128xf32, #tpu.memory_space<vmem>>, %arg2: memref<128x128xf32, #tpu.memory_space<vmem>>, %arg3: memref<1x128xf32, #tpu.memory_space<vmem>>, %arg4: memref<8x1xi32, #tpu.memory_space<vmem>>, %arg5: memref<1x1xf32, #tpu.memory_space<smem>>) attributes {dimension_semantics = [#tpu.dimension_semantics<parallel>], iteration_bounds = array<i64: 1>, scalar_prefetch = 0 : i64, scratch_operands = 0 : i64, tpu.core_type = #tpu.core_type<tc>, window_params = [{transform_indices = @transform_0, window_bounds = array<i64: 8, 128>}, {pipeline_mode = #tpu.pipeline_mode<synchronous>, transform_indices = @transform_1, window_bounds = array<i64: 128, 128>}, {pipeline_mode = #tpu.pipeline_mode<synchronous>, transform_indices = @transform_2, window_bounds = array<i64: 1, 128>}, {transform_indices = @transform_3, window_bounds = array<i64: 8, 1>}, {transform_indices = @transform_4, window_bounds = array<i64: 1, 1>}]} {
    %c0 = arith.constant 0 : index
    %c0_0 = arith.constant 0 : index
    %0 = vector.load %arg1[%c0, %c0_0] : memref<8x128xf32, #tpu.memory_space<vmem>>, vector<8x128xf32>
    %c0_1 = arith.constant 0 : index
    %c0_2 = arith.constant 0 : index
    %1 = vector.load %arg2[%c0_1, %c0_2] : memref<128x128xf32, #tpu.memory_space<vmem>>, vector<128x128xf32>
    %c0_3 = arith.constant 0 : index
    %c0_4 = arith.constant 0 : index
    %2 = vector.load %arg4[%c0_3, %c0_4] : memref<8x1xi32, #tpu.memory_space<vmem>>, vector<8x1xi32>
    %c0_5 = arith.constant 0 : index
    %c0_6 = arith.constant 0 : index
    %3 = vector.load %arg3[%c0_5, %c0_6] : memref<1x128xf32, #tpu.memory_space<vmem>>, vector<1x128xf32>
    %4 = arith.mulf %0, %0 : vector<8x128xf32>
    %cst = arith.constant dense<0.000000e+00> : vector<8xf32>
    %5 = vector.multi_reduction <add>, %4, %cst [1] : vector<8x128xf32> to vector<8xf32>
    %6 = vector.shape_cast %5 : vector<8xf32> to vector<8x1xf32>
    %cst_7 = arith.constant 5.000000e-01 : f32
    %7 = vector.broadcast %cst_7 : f32 to vector<8x1xf32>
    %8 = arith.mulf %7, %6 : vector<8x1xf32>
    %cst_8 = arith.constant dense<0.000000e+00> : vector<8x128xf32>
    %9 = tpu.matmul %0, %1, %cst_8 {dimension_numbers = #tpu.dot_dimension_numbers<[1], [0], [0], [1], [0, 0, 1, 1], [], []>} : vector<8x128xf32>, vector<128x128xf32>, vector<8x128xf32> -> vector<8x128xf32>
    %10 = vector.broadcast %8 : vector<8x1xf32> to vector<8x128xf32>
    %11 = vector.broadcast %3 : vector<1x128xf32> to vector<8x128xf32>
    %12 = arith.addf %10, %11 : vector<8x128xf32>
    %13 = arith.subf %12, %9 : vector<8x128xf32>
    %cst_9 = arith.constant 0.000000e+00 : f32
    %14 = vector.broadcast %cst_9 : f32 to vector<8x128xf32>
    %15 = arith.maximumf %13, %14 : vector<8x128xf32>
    %16 = tpu.iota {dimensions = array<i32: 1>} : vector<8x128xi32>
    %17 = vector.broadcast %2 : vector<8x1xi32> to vector<8x128xi32>
    %18 = arith.cmpi eq, %16, %17 : vector<8x128xi32>
    %cst_10 = arith.constant 0.000000e+00 : f32
    %19 = vector.broadcast %cst_10 : f32 to vector<8x128xf32>
    %20 = arith.select %18, %15, %19 : vector<8x128xi1>, vector<8x128xf32>
    %cst_11 = arith.constant dense<0.000000e+00> : vector<8xf32>
    %21 = vector.multi_reduction <add>, %20, %cst_11 [1] : vector<8x128xf32> to vector<8xf32>
    %22 = vector.shape_cast %21 : vector<8xf32> to vector<8x1xf32>
    %cst_12 = arith.constant 1.000000e+30 : f32
    %23 = vector.broadcast %cst_12 : f32 to vector<8x128xf32>
    %24 = arith.select %18, %23, %15 : vector<8x128xi1>, vector<8x128xf32>
    %cst_13 = arith.constant dense<0x7F800000> : vector<8xf32>
    %25 = vector.multi_reduction <minimumf>, %24, %cst_13 [1] : vector<8x128xf32> to vector<8xf32>
    %26 = vector.shape_cast %25 : vector<8xf32> to vector<8x1xf32>
    %cst_14 = arith.constant 5.000000e+00 : f32
    %27 = vector.broadcast %cst_14 : f32 to vector<8x1xf32>
    %28 = arith.addf %22, %27 : vector<8x1xf32>
    %29 = arith.subf %28, %26 : vector<8x1xf32>
    %cst_15 = arith.constant 0.000000e+00 : f32
    %30 = vector.broadcast %cst_15 : f32 to vector<8x1xf32>
    %31 = arith.maximumf %29, %30 : vector<8x1xf32>
    %32 = math.absf %29 : vector<8x1xf32>
    %cst_16 = arith.constant 0.000000e+00 : f32
    %33 = vector.broadcast %cst_16 : f32 to vector<8x1xf32>
    %34 = arith.subf %33, %32 : vector<8x1xf32>
    %35 = math.exp %34 : vector<8x1xf32>
    %36 = math.log1p %35 : vector<8x1xf32>
    %37 = arith.addf %31, %36 : vector<8x1xf32>
    %c8_i32 = arith.constant 8 : i32
    %38 = arith.muli %arg0, %c8_i32 : i32
    %39 = tpu.iota {dimensions = array<i32: 0>} : vector<8x1xi32>
    %40 = vector.broadcast %38 : i32 to vector<8x1xi32>
    %41 = arith.addi %40, %39 : vector<8x1xi32>
    %c8_i32_17 = arith.constant 8 : i32
    %42 = vector.broadcast %c8_i32_17 : i32 to vector<8x1xi32>
    %43 = arith.cmpi slt, %41, %42 : vector<8x1xi32>
    %cst_18 = arith.constant 0.000000e+00 : f32
    %44 = vector.broadcast %cst_18 : f32 to vector<8x1xf32>
    %45 = arith.select %43, %37, %44 : vector<8x1xi1>, vector<8x1xf32>
    %46 = vector.shape_cast %45 : vector<8x1xf32> to vector<1x8x1xf32>
    %cst_19 = arith.constant dense<0.000000e+00> : vector<1xf32>
    %47 = vector.multi_reduction <add>, %46, %cst_19 [1, 2] : vector<1x8x1xf32> to vector<1xf32>
    %48 = vector.shape_cast %47 : vector<1xf32> to vector<1x1x1xf32>
    %49 = vector.extract %48[0, 0, 0] : f32 from vector<1x1x1xf32>
    %c0_20 = arith.constant 0 : index
    %c0_21 = arith.constant 0 : index
    %50 = memref.load %arg5[%c0_20, %c0_21] : memref<1x1xf32, #tpu.memory_space<smem>>
    memref.store %49, %arg5[%c0_20, %c0_21] : memref<1x1xf32, #tpu.memory_space<smem>>
    return
  }
  func.func @transform_0(%arg0: i32) -> (i32, i32) {
    %c0_i32 = arith.constant 0 : i32
    %c0_i32_0 = arith.constant 0 : i32
    return %arg0, %c0_i32 : i32, i32
  }
  func.func @transform_1(%arg0: i32) -> (i32, i32) {
    %c0_i32 = arith.constant 0 : i32
    %c0_i32_0 = arith.constant 0 : i32
    %c0_i32_1 = arith.constant 0 : i32
    return %c0_i32, %c0_i32_0 : i32, i32
  }
  func.func @transform_2(%arg0: i32) -> (i32, i32) {
    %c0_i32 = arith.constant 0 : i32
    %c0_i32_0 = arith.constant 0 : i32
    %c0_i32_1 = arith.constant 0 : i32
    return %c0_i32, %c0_i32_0 : i32, i32
  }
  func.func @transform_3(%arg0: i32) -> (i32, i32) {
    %c0_i32 = arith.constant 0 : i32
    %c0_i32_0 = arith.constant 0 : i32
    return %arg0, %c0_i32 : i32, i32
  }
  func.func @transform_4(%arg0: i32) -> (i32, i32) {
    %c0_i32 = arith.constant 0 : i32
    %c0_i32_0 = arith.constant 0 : i32
    return %arg0, %c0_i32 : i32, i32
  }
}

module attributes {stable_mosaic.version = 11 : i64} {
  func.func @_tcl_kernel(%arg0: i32, %arg1: memref<8x128xf32, #tpu.memory_space<vmem>>, %arg2: memref<128x128xf32, #tpu.memory_space<vmem>>, %arg3: memref<1x128xf32, #tpu.memory_space<vmem>>, %arg4: memref<8x1xi32, #tpu.memory_space<vmem>>, %arg5: memref<1x1xf32, #tpu.memory_space<smem>>) attributes {dimension_semantics = [#tpu.dimension_semantics<parallel>], iteration_bounds = array<i64: 1>, scalar_prefetch = 0 : i64, scratch_operands = 0 : i64, tpu.core_type = #tpu.core_type<tc>, window_params = [{transform_indices = @transform_0, window_bounds = array<i64: 8, 128>}, {pipeline_mode = #tpu.pipeline_mode<synchronous>, transform_indices = @transform_1, window_bounds = array<i64: 128, 128>}, {pipeline_mode = #tpu.pipeline_mode<synchronous>, transform_indices = @transform_2, window_bounds = array<i64: 1, 128>}, {transform_indices = @transform_3, window_bounds = array<i64: 8, 1>}, {transform_indices = @transform_4, window_bounds = array<i64: 1, 1>}]} {
    %c0 = arith.constant 0 : index
    %c0_0 = arith.constant 0 : index
    %0 = vector.load %arg1[%c0, %c0_0] : memref<8x128xf32, #tpu.memory_space<vmem>>, vector<8x128xf32>
    %c0_1 = arith.constant 0 : index
    %c0_2 = arith.constant 0 : index
    %1 = vector.load %arg2[%c0_1, %c0_2] : memref<128x128xf32, #tpu.memory_space<vmem>>, vector<128x128xf32>
    %c0_3 = arith.constant 0 : index
    %c0_4 = arith.constant 0 : index
    %2 = vector.load %arg4[%c0_3, %c0_4] : memref<8x1xi32, #tpu.memory_space<vmem>>, vector<8x1xi32>
    %c0_5 = arith.constant 0 : index
    %c0_6 = arith.constant 0 : index
    %3 = vector.load %arg3[%c0_5, %c0_6] : memref<1x128xf32, #tpu.memory_space<vmem>>, vector<1x128xf32>
    %4 = arith.mulf %0, %0 : vector<8x128xf32>
    %cst = arith.constant dense<0.000000e+00> : vector<8xf32>
    %5 = vector.multi_reduction <add>, %4, %cst [1] : vector<8x128xf32> to vector<8xf32>
    %6 = vector.shape_cast %5 : vector<8xf32> to vector<8x1xf32>
    %cst_7 = arith.constant 5.000000e-01 : f32
    %7 = vector.broadcast %cst_7 : f32 to vector<8x1xf32>
    %8 = arith.mulf %7, %6 : vector<8x1xf32>
    %cst_8 = arith.constant dense<0.000000e+00> : vector<8x128xf32>
    %9 = tpu.matmul %0, %1, %cst_8 {dimension_numbers = #tpu.dot_dimension_numbers<[1], [0], [0], [1], [0, 0, 1, 1], [], []>} : vector<8x128xf32>, vector<128x128xf32>, vector<8x128xf32> -> vector<8x128xf32>
    %10 = vector.broadcast %8 : vector<8x1xf32> to vector<8x128xf32>
    %11 = vector.broadcast %3 : vector<1x128xf32> to vector<8x128xf32>
    %12 = arith.addf %10, %11 : vector<8x128xf32>
    %13 = arith.subf %12, %9 : vector<8x128xf32>
    %cst_9 = arith.constant 0.000000e+00 : f32
    %14 = vector.broadcast %cst_9 : f32 to vector<8x128xf32>
    %15 = arith.maximumf %13, %14 : vector<8x128xf32>
    %16 = tpu.iota {dimensions = array<i32: 1>} : vector<8x128xi32>
    %17 = vector.broadcast %2 : vector<8x1xi32> to vector<8x128xi32>
    %18 = arith.cmpi eq, %16, %17 : vector<8x128xi32>
    %cst_10 = arith.constant 0.000000e+00 : f32
    %19 = vector.broadcast %cst_10 : f32 to vector<8x128xf32>
    %20 = arith.select %18, %15, %19 : vector<8x128xi1>, vector<8x128xf32>
    %cst_11 = arith.constant dense<0.000000e+00> : vector<8xf32>
    %21 = vector.multi_reduction <add>, %20, %cst_11 [1] : vector<8x128xf32> to vector<8xf32>
    %22 = vector.shape_cast %21 : vector<8xf32> to vector<8x1xf32>
    %cst_12 = arith.constant 1.000000e+30 : f32
    %23 = vector.broadcast %cst_12 : f32 to vector<8x128xf32>
    %24 = arith.select %18, %23, %15 : vector<8x128xi1>, vector<8x128xf32>
    %cst_13 = arith.constant dense<0x7F800000> : vector<8xf32>
    %25 = vector.multi_reduction <minimumf>, %24, %cst_13 [1] : vector<8x128xf32> to vector<8xf32>
    %26 = vector.shape_cast %25 : vector<8xf32> to vector<8x1xf32>
    %cst_14 = arith.constant 5.000000e+00 : f32
    %27 = vector.broadcast %cst_14 : f32 to vector<8x1xf32>
    %28 = arith.addf %22, %27 : vector<8x1xf32>
    %29 = arith.subf %28, %26 : vector<8x1xf32>
    %cst_15 = arith.constant 0.000000e+00 : f32
    %30 = vector.broadcast %cst_15 : f32 to vector<8x1xf32>
    %31 = arith.maximumf %29, %30 : vector<8x1xf32>
    %32 = math.absf %29 : vector<8x1xf32>
    %cst_16 = arith.constant 0.000000e+00 : f32
    %33 = vector.broadcast %cst_16 : f32 to vector<8x1xf32>
    %34 = arith.subf %33, %32 : vector<8x1xf32>
    %35 = math.exp %34 : vector<8x1xf32>
    %36 = math.log1p %35 : vector<8x1xf32>
    %37 = arith.addf %31, %36 : vector<8x1xf32>
    %c8_i32 = arith.constant 8 : i32
    %38 = arith.muli %arg0, %c8_i32 : i32
    %39 = tpu.iota {dimensions = array<i32: 0>} : vector<8x1xi32>
    %40 = vector.broadcast %38 : i32 to vector<8x1xi32>
    %41 = arith.addi %40, %39 : vector<8x1xi32>
    %c8_i32_17 = arith.constant 8 : i32
    %42 = vector.broadcast %c8_i32_17 : i32 to vector<8x1xi32>
    %43 = arith.cmpi slt, %41, %42 : vector<8x1xi32>
    %cst_18 = arith.constant 0.000000e+00 : f32
    %44 = vector.broadcast %cst_18 : f32 to vector<8x1xf32>
    %45 = arith.select %43, %37, %44 : vector<8x1xi1>, vector<8x1xf32>
    %46 = vector.shape_cast %45 : vector<8x1xf32> to vector<1x8x1xf32>
    %cst_19 = arith.constant dense<0.000000e+00> : vector<1xf32>
    %47 = vector.multi_reduction <add>, %46, %cst_19 [1, 2] : vector<1x8x1xf32> to vector<1xf32>
    %48 = vector.shape_cast %47 : vector<1xf32> to vector<1x1x1xf32>
    %49 = vector.extract %48[0, 0, 0] : f32 from vector<1x1x1xf32>
    %c0_20 = arith.constant 0 : index
    %c0_21 = arith.constant 0 : index
    %50 = memref.load %arg5[%c0_20, %c0_21] : memref<1x1xf32, #tpu.memory_space<smem>>
    memref.store %49, %arg5[%c0_20, %c0_21] : memref<1x1xf32, #tpu.memory_space<smem>>
    return
  }
  func.func @transform_0(%arg0: i32) -> (i32, i32) {
    %c0_i32 = arith.constant 0 : i32
    %c0_i32_0 = arith.constant 0 : i32
    return %arg0, %c0_i32 : i32, i32
  }
  func.func @transform_1(%arg0: i32) -> (i32, i32) {
    %c0_i32 = arith.constant 0 : i32
    %c0_i32_0 = arith.constant 0 : i32
    %c0_i32_1 = arith.constant 0 : i32
    return %c0_i32, %c0_i32_0 : i32, i32
  }
  func.func @transform_2(%arg0: i32) -> (i32, i32) {
    %c0_i32 = arith.constant 0 : i32
    %c0_i32_0 = arith.constant 0 : i32
    %c0_i32_1 = arith.constant 0 : i32
    return %c0_i32, %c0_i32_0 : i32, i32
  }
  func.func @transform_3(%arg0: i32) -> (i32, i32) {
    %c0_i32 = arith.constant 0 : i32
    %c0_i32_0 = arith.constant 0 : i32
    return %arg0, %c0_i32 : i32, i32
  }
  func.func @transform_4(%arg0: i32) -> (i32, i32) {
    %c0_i32 = arith.constant 0 : i32
    %c0_i32_0 = arith.constant 0 : i32
    return %arg0, %c0_i32 : i32, i32
  }
}

</mosaic_0001>

<bundles_post_ra>
// kernel: tpu_custom_call.1
= control target key start
LH: loop header
LB: loop body
LE: loop exit
PB: predicated region body
PF: predicated region fallthrough
CT: control target
= control target key end

     0   :  { %9 = vsyncpa [#allocation3], 0  ;;  %s391_s0 = inlined_call_operand.vmem [shape: f32[8,128], index: 0, kind: input, shape index: {}]   ;;  %s392_s1 = inlined_call_operand.hbm [shape: f32[128,128], index: 1, kind: input, shape index: {}]   ;;  %s393_s2 = inlined_call_operand.vmem [shape: f32[1,128], index: 2, kind: input, shape index: {}]   ;;  %s394_s3 = inlined_call_operand.vmem [shape: s32[8,1], index: 3, kind: input, shape index: {}]   ;;  %s395_s4 = inlined_call_operand.hbm [shape: f32[1,1], index: 4, kind: output, shape index: {}]  }
   0x1   :  { %10 = vsyncpa [#allocation4], 0  ;;  %s325_s15 = smov [#allocation2]   ;;  %s289_s19 = scalar_lea.hbm %s392_s1, 2048 }
   0x2   :  { %s18_s16 = sshll.u32 %s325_s15, 4  ;;  %p290_p0 = scmp.ne.s32.totalorder %s392_s1, %s289_s19  ;;  %s19_s16 = int_to_ptr.vmem [resolvable:$true] %s18_s16 }
   0x3   :  { %p293_p1 = scmp.lt.u32.totalorder %s289_s19, %s392_s1 }
   0x5   :  { %p295_p2 = pnand %p293_p1, %p290_p0 }
   0x7   :  { %298 = shalt.err (!%p295_p2)
}
   0x8   :  { %s299_s24 = scalar_lea.vmem %s19_s16, 2048  ;;  %p304_p4 = scmp.lt.s32.totalorder %s19_s16, %s19_s16 }
   0x9   :  { %p300_p3 = scmp.ne.s32.totalorder %s19_s16, %s299_s24  ;;  %p305_p5 = scmp.lt.s32.totalorder %s299_s24, %s299_s24 }
   0xb   :  { %p306_p6 = por %p305_p5, %p304_p4 }
   0xd   :  { %p307_p7 = pnand %p306_p6, %p300_p3 }
   0xf   :  { %310 = shalt.err (!%p307_p7)
}
  0x10   :  { %s326_s25 = smov 128   ;;  %s327_s26 = smov 8  }
  0x11   :  { %24 = dma.hbm_to_vmem [thread:$0]  %s392_s1, 2048, %s19_s16, [#allocation3], %s326_s25, %s326_s25, %s327_s26  }
  0x12   :  { %321 = dma.done.wait [#allocation3], 2048  }
  0x13   :  { %322 = vsyncadd [#allocation3], 4294965248  ;;  %v328_v0 = vmov 0.0|0.0   ;;  %vm329_vm0 = vmmov 0   ;;  %v330_v1 = vmov 0.0   ;;  %v331_v2 = vmov 0  }
  0x14   :  { %250 = vmatprep.subr.bf16.mxu0 %v328_v0  ;;  %247 = vmatprep.mubr.msk.f32.mxu0 %vm329_vm0, %v330_v1  ;;  %v33_v3 = vld [vmem:[#allocation2] sm:$0xff]  ;;  %v34_v4 = vld [vmem:[#allocation2 + $0x8] sm:$0xff]  ;;  %v35_v5 = vld [vmem:[#allocation2 + $0x10] sm:$0xff]  ;;  %v134_v33 = vlaneseq  ;;  %vm170_vm3 = vcmask 7168   ;;  %s311_s8 = scalar_lea.hbm %s395_s4, 16 }
  0x15   :  { %284 = vset.pattern.permute.xlu0 %v331_v2  ;;  %v251_v6 = vpack.c.bf16 %v34_v4, %v33_v3  ;;  %v36_v7 = vld [vmem:[#allocation2 + $0x18] sm:$0xff]  ;;  %v37_v9 = vld [vmem:[#allocation2 + $0x20] sm:$0xff]  ;;  %v38_v10 = vld [vmem:[#allocation2 + $0x28] sm:$0xff]  ;;  %p312_p8 = scmp.ne.s32.totalorder %s395_s4, %s311_s8  ;;  %p315_p9 = scmp.lt.u32.totalorder %s311_s8, %s395_s4 }
  0x16   :  { %v254_v8 = vpack.c.bf16 %v36_v7, %v35_v5  ;;  %v32_v11 = vld [vmem:[%s391_s0] sm:$0xff]  ;;  %v257_v13 = vpack.c.bf16 %v38_v10, %v37_v9  ;;  %v39_v14 = vld [vmem:[#allocation2 + $0x30] sm:$0xff]  ;;  %v40_v15 = vld [vmem:[#allocation2 + $0x38] sm:$0xff]  ;;  %v135_v35 = vand.u32 127, %v134_v33 }
  0x17   :  { %252 = vmatpush3.bf16.msra.mxu0 %v251_v6  ;;  %v51_v12 = vmul.f32 %v32_v11, %v32_v11  ;;  %v260_v16 = vpack.c.bf16 %v40_v15, %v39_v14  ;;  %v41_v17 = vld [vmem:[#allocation2 + $0x40] sm:$0xff]  ;;  %v42_v18 = vld [vmem:[#allocation2 + $0x48] sm:$0xff]  ;;  %v43_v20 = vld [vmem:[#allocation2 + $0x50] sm:$0xff]  ;;  %p317_p10 = pnand %p315_p9, %p312_p8 }
  0x18   :  { %253 = vmatprep.subr.bf16.mxu0 %v328_v0  ;;  %v263_v19 = vpack.c.bf16 %v42_v18, %v41_v17  ;;  %v44_v21 = vld [vmem:[#allocation2 + $0x58] sm:$0xff]  ;;  %v45_v23 = vld [vmem:[#allocation2 + $0x60] sm:$0xff]  ;;  %v46_v24 = vld [vmem:[#allocation2 + $0x68] sm:$0xff] }
  0x19   :  { %52 = vadd.xlane.f32.xlu0 %v51_v12  ;;  %v266_v22 = vpack.c.bf16 %v44_v21, %v43_v20  ;;  %v269_v25 = vpack.c.bf16 %v46_v24, %v45_v23  ;;  %v47_v26 = vld [vmem:[#allocation2 + $0x70] sm:$0xff]  ;;  %v48_v27 = vld [vmem:[#allocation2 + $0x78] sm:$0xff]  ;;  %v49_v29 = vld [vmem:[%s394_s3] sm:$0xff] }
  0x1a   :  { %v272_v28 = vpack.c.bf16 %v48_v27, %v47_v26  ;;  %v197_v32 = vld [vmem:[%s393_s2] ss:$0 sm:$0xff] }
  0x1b   :  { %255 = vmatpush3.bf16.msra.mxu0 %v254_v8 }
  0x1c   :  { %256 = vmatprep.subr.bf16.mxu0 %v328_v0 }
  0x1f   :  { %258 = vmatpush3.bf16.msra.mxu0 %v257_v13 }
  0x20   :  { %259 = vmatprep.subr.bf16.mxu0 %v328_v0 }
  0x23   :  { %261 = vmatpush3.bf16.msra.mxu0 %v260_v16 }
  0x24   :  { %262 = vmatprep.subr.bf16.mxu0 %v328_v0 }
  0x27   :  { %264 = vmatpush3.bf16.msra.mxu0 %v263_v19 }
  0x28   :  { %265 = vmatprep.subr.bf16.mxu0 %v328_v0 }
  0x2b   :  { %267 = vmatpush3.bf16.msra.mxu0 %v266_v22 }
  0x2c   :  { %268 = vmatprep.subr.bf16.mxu0 %v328_v0 }
  0x2f   :  { %270 = vmatpush3.bf16.msra.mxu0 %v269_v25  ;;  %137 = vperm.xlu0 %284, %v49_v29  }
  0x30   :  { %271 = vmatprep.subr.bf16.mxu0 %v328_v0 }
  0x33   :  { %273 = vmatpush3.bf16.msra.mxu0 %v272_v28 }
  0x36   :  { %248 = vmatmul.mubr.f32.vlgmr.msra.gmra.mrb[0].mxu0 %v32_v11 }
  0xa6   :  { %v53_v30 = vpop.xlane.xlu0 %52 }
  0xa7   :  { %v54_v31 = vmul.f32 0.5, %v53_v30 }
  0xa9   :  { %v131_v34 = vadd.f32 %v197_v32, %v54_v31 }
  0xae   :  { %v138_v36 = vpop.permute.xlu0 %137 }
  0xaf   :  { %vm139_vm1 = vcmp.eq.s32.totalorder %v135_v35, %v138_v36 }
 0x109   :  { %v121_v37 = vpop.f32.mrb[0].mxu0 }
 0x10a   :  { %v132_v38 = vsub.f32 %v131_v34, %v121_v37  ;;  %v249_v39 = vpop.f32.mrb[1].mxu0 }
 0x10c   :  { %v133_v40 = vmax.f32 %v132_v38, 0.0 }
 0x10e   :  { %v140_v41 = vsel %vm139_vm1, %v133_v40, 0.0  ;;  %v143_v42 = vsel %vm139_vm1, 1e+30, %v133_v40 }
 0x10f   :  { %141 = vadd.xlane.f32.xlu1 %v140_v41 }
 0x113   :  { %144 = vmin.xlane.f32.xlu1 %v143_v42 }
 0x19c   :  { %v142_v43 = vpop.xlane.xlu1 %141 }
 0x19d   :  { %v146_v44 = vadd.f32 5.0, %v142_v43 }
 0x1a0   :  { %v145_v45 = vpop.xlane.xlu1 %144 }
 0x1a1   :  { %v147_v46 = vsub.f32 %v146_v44, %v145_v45 }
 0x1a3   :  { %v149_v47 = vand.u32 2147483647, %v147_v46  ;;  %v148_v58 = vmax.f32 %v147_v46, 0.0 }
 0x1a5   :  { %v150_v48 = vsub.f32 0.0, %v149_v47 }
 0x1a7   :  { %v151_v49 = vmul.f32 1.442695, %v150_v48 }
 0x1a9   :  { %285 = vpow2.f32 %v151_v49 }
 0x1b3   :  { %v286_v50 = vpop.eup %285 }
 0x1b4   :  { %v153_v51 = vadd.f32 1.0, %v286_v50  ;;  %v156_v52 = vmul.f32 -0.5, %v286_v50  ;;  %v159_v54 = vand.u32 2147483647, %v286_v50 }
 0x1b6   :  { %287 = vlog2.f32 %v153_v51  ;;  %v157_v53 = vadd.f32 1.0, %v156_v52  ;;  %vm160_vm2 = vcmp.lt.f32.partialorder %v159_v54, 0.0004427343 }
 0x1b8   :  { %v158_v57 = vmul.f32 %v286_v50, %v157_v53 }
 0x1c0   :  { %v288_v55 = vpop.eup %287 }
 0x1c1   :  { %v155_v56 = vmul.f32 0.6931472, %v288_v55 }
 0x1c3   :  { %v161_v59 = vsel %vm160_vm2, %v158_v57, %v155_v56 }
 0x1c4   :  { %v162_v60 = vadd.f32 %v161_v59, %v148_v58 }
 0x1c6   :  { %v171_v61 = vsel %vm170_vm3, %v162_v60, 0.0 }
 0x1c7   :  { %172 = vadd.xlane.f32.xlu1 %v171_v61 }
 0x254   :  { %v173_v62 = vpop.xlane.xlu1 %172 }
 0x255   :  { %v174_v63 = vrot.slane %v173_v62, 4 }
 0x257   :  { %v175_v0 = vadd.f32 %v174_v63, %v173_v62 }
 0x259   :  { %v176_v1 = vrot.slane %v175_v0, 2 }
 0x25b   :  { %v177_v2 = vadd.f32 %v176_v1, %v175_v0 }
 0x25d   :  { %v178_v3 = vrot.slane %v177_v2, 1 }
 0x25f   :  { %v179_v4 = vadd.f32 %v178_v3, %v177_v2 }
 0x261   :  { %274 = vpush %v179_v4 }
 0x292   :  { %s275_s2 = spop %274 }
 0x293   :  { %182 = sst [smem:[#allocation5]] %s275_s2 }
 0x294   :  { %320 = shalt.err (!%p317_p10)
}
 0x295   :  { %s332_s13 = smov [#allocation5]  }
 0x296   :  { %190 = dma.smem_to_hbm %s332_s13, 16, %s395_s4, [#allocation4]  }
 0x297   :  { %323 = dma.done.wait [#allocation4], 16  }
 0x298   :  { %324 = vsyncadd [#allocation4], 4294967280 }
 0x299   :  { %194 = sfence }
 0x29a   :  { %195 = vsyncpa [#allocation3], 1 }
 0x29b   :  { %196 = vsyncpa [#allocation4], 1 }

// kernel: tpu_custom_call.1
= control target key start
LH: loop header
LB: loop body
LE: loop exit
PB: predicated region body
PF: predicated region fallthrough
CT: control target
= control target key end

     0   :  { %9 = vsyncpa [#allocation3], 0  ;;  %s391_s0 = inlined_call_operand.vmem [shape: f32[8,128], index: 0, kind: input, shape index: {}]   ;;  %s392_s1 = inlined_call_operand.hbm [shape: f32[128,128], index: 1, kind: input, shape index: {}]   ;;  %s393_s2 = inlined_call_operand.vmem [shape: f32[1,128], index: 2, kind: input, shape index: {}]   ;;  %s394_s3 = inlined_call_operand.vmem [shape: s32[8,1], index: 3, kind: input, shape index: {}]   ;;  %s395_s4 = inlined_call_operand.hbm [shape: f32[1,1], index: 4, kind: output, shape index: {}]  }
   0x1   :  { %10 = vsyncpa [#allocation4], 0  ;;  %s325_s15 = smov [#allocation2]   ;;  %s289_s19 = scalar_lea.hbm %s392_s1, 2048 }
   0x2   :  { %s18_s16 = sshll.u32 %s325_s15, 4  ;;  %p290_p0 = scmp.ne.s32.totalorder %s392_s1, %s289_s19  ;;  %s19_s16 = int_to_ptr.vmem [resolvable:$true] %s18_s16 }
   0x3   :  { %p293_p1 = scmp.lt.u32.totalorder %s289_s19, %s392_s1 }
   0x5   :  { %p295_p2 = pnand %p293_p1, %p290_p0 }
   0x7   :  { %298 = shalt.err (!%p295_p2)
}
   0x8   :  { %s299_s24 = scalar_lea.vmem %s19_s16, 2048  ;;  %p304_p4 = scmp.lt.s32.totalorder %s19_s16, %s19_s16 }
   0x9   :  { %p300_p3 = scmp.ne.s32.totalorder %s19_s16, %s299_s24  ;;  %p305_p5 = scmp.lt.s32.totalorder %s299_s24, %s299_s24 }
   0xb   :  { %p306_p6 = por %p305_p5, %p304_p4 }
   0xd   :  { %p307_p7 = pnand %p306_p6, %p300_p3 }
   0xf   :  { %310 = shalt.err (!%p307_p7)
}
  0x10   :  { %s326_s25 = smov 128   ;;  %s327_s26 = smov 8  }
  0x11   :  { %24 = dma.hbm_to_vmem [thread:$0]  %s392_s1, 2048, %s19_s16, [#allocation3], %s326_s25, %s326_s25, %s327_s26  }
  0x12   :  { %321 = dma.done.wait [#allocation3], 2048  }
  0x13   :  { %322 = vsyncadd [#allocation3], 4294965248  ;;  %v328_v0 = vmov 0.0|0.0   ;;  %vm329_vm0 = vmmov 0   ;;  %v330_v1 = vmov 0.0   ;;  %v331_v2 = vmov 0  }
  0x14   :  { %250 = vmatprep.subr.bf16.mxu0 %v328_v0  ;;  %247 = vmatprep.mubr.msk.f32.mxu0 %vm329_vm0, %v330_v1  ;;  %v33_v3 = vld [vmem:[#allocation2] sm:$0xff]  ;;  %v34_v4 = vld [vmem:[#allocation2 + $0x8] sm:$0xff]  ;;  %v35_v5 = vld [vmem:[#allocation2 + $0x10] sm:$0xff]  ;;  %v134_v33 = vlaneseq  ;;  %vm170_vm3 = vcmask 7168   ;;  %s311_s8 = scalar_lea.hbm %s395_s4, 16 }
  0x15   :  { %284 = vset.pattern.permute.xlu0 %v331_v2  ;;  %v251_v6 = vpack.c.bf16 %v34_v4, %v33_v3  ;;  %v36_v7 = vld [vmem:[#allocation2 + $0x18] sm:$0xff]  ;;  %v37_v9 = vld [vmem:[#allocation2 + $0x20] sm:$0xff]  ;;  %v38_v10 = vld [vmem:[#allocation2 + $0x28] sm:$0xff]  ;;  %p312_p8 = scmp.ne.s32.totalorder %s395_s4, %s311_s8  ;;  %p315_p9 = scmp.lt.u32.totalorder %s311_s8, %s395_s4 }
  0x16   :  { %v254_v8 = vpack.c.bf16 %v36_v7, %v35_v5  ;;  %v32_v11 = vld [vmem:[%s391_s0] sm:$0xff]  ;;  %v257_v13 = vpack.c.bf16 %v38_v10, %v37_v9  ;;  %v39_v14 = vld [vmem:[#allocation2 + $0x30] sm:$0xff]  ;;  %v40_v15 = vld [vmem:[#allocation2 + $0x38] sm:$0xff]  ;;  %v135_v35 = vand.u32 127, %v134_v33 }
  0x17   :  { %252 = vmatpush3.bf16.msra.mxu0 %v251_v6  ;;  %v51_v12 = vmul.f32 %v32_v11, %v32_v11  ;;  %v260_v16 = vpack.c.bf16 %v40_v15, %v39_v14  ;;  %v41_v17 = vld [vmem:[#allocation2 + $0x40] sm:$0xff]  ;;  %v42_v18 = vld [vmem:[#allocation2 + $0x48] sm:$0xff]  ;;  %v43_v20 = vld [vmem:[#allocation2 + $0x50] sm:$0xff]  ;;  %p317_p10 = pnand %p315_p9, %p312_p8 }
  0x18   :  { %253 = vmatprep.subr.bf16.mxu0 %v328_v0  ;;  %v263_v19 = vpack.c.bf16 %v42_v18, %v41_v17  ;;  %v44_v21 = vld [vmem:[#allocation2 + $0x58] sm:$0xff]  ;;  %v45_v23 = vld [vmem:[#allocation2 + $0x60] sm:$0xff]  ;;  %v46_v24 = vld [vmem:[#allocation2 + $0x68] sm:$0xff] }
  0x19   :  { %52 = vadd.xlane.f32.xlu0 %v51_v12  ;;  %v266_v22 = vpack.c.bf16 %v44_v21, %v43_v20  ;;  %v269_v25 = vpack.c.bf16 %v46_v24, %v45_v23  ;;  %v47_v26 = vld [vmem:[#allocation2 + $0x70] sm:$0xff]  ;;  %v48_v27 = vld [vmem:[#allocation2 + $0x78] sm:$0xff]  ;;  %v49_v29 = vld [vmem:[%s394_s3] sm:$0xff] }
  0x1a   :  { %v272_v28 = vpack.c.bf16 %v48_v27, %v47_v26  ;;  %v197_v32 = vld [vmem:[%s393_s2] ss:$0 sm:$0xff] }
  0x1b   :  { %255 = vmatpush3.bf16.msra.mxu0 %v254_v8 }
  0x1c   :  { %256 = vmatprep.subr.bf16.mxu0 %v328_v0 }
  0x1f   :  { %258 = vmatpush3.bf16.msra.mxu0 %v257_v13 }
  0x20   :  { %259 = vmatprep.subr.bf16.mxu0 %v328_v0 }
  0x23   :  { %261 = vmatpush3.bf16.msra.mxu0 %v260_v16 }
  0x24   :  { %262 = vmatprep.subr.bf16.mxu0 %v328_v0 }
  0x27   :  { %264 = vmatpush3.bf16.msra.mxu0 %v263_v19 }
  0x28   :  { %265 = vmatprep.subr.bf16.mxu0 %v328_v0 }
  0x2b   :  { %267 = vmatpush3.bf16.msra.mxu0 %v266_v22 }
  0x2c   :  { %268 = vmatprep.subr.bf16.mxu0 %v328_v0 }
  0x2f   :  { %270 = vmatpush3.bf16.msra.mxu0 %v269_v25  ;;  %137 = vperm.xlu0 %284, %v49_v29  }
  0x30   :  { %271 = vmatprep.subr.bf16.mxu0 %v328_v0 }
  0x33   :  { %273 = vmatpush3.bf16.msra.mxu0 %v272_v28 }
  0x36   :  { %248 = vmatmul.mubr.f32.vlgmr.msra.gmra.mrb[0].mxu0 %v32_v11 }
  0xa6   :  { %v53_v30 = vpop.xlane.xlu0 %52 }
  0xa7   :  { %v54_v31 = vmul.f32 0.5, %v53_v30 }
  0xa9   :  { %v131_v34 = vadd.f32 %v197_v32, %v54_v31 }
  0xae   :  { %v138_v36 = vpop.permute.xlu0 %137 }
  0xaf   :  { %vm139_vm1 = vcmp.eq.s32.totalorder %v135_v35, %v138_v36 }
 0x109   :  { %v121_v37 = vpop.f32.mrb[0].mxu0 }
 0x10a   :  { %v132_v38 = vsub.f32 %v131_v34, %v121_v37  ;;  %v249_v39 = vpop.f32.mrb[1].mxu0 }
 0x10c   :  { %v133_v40 = vmax.f32 %v132_v38, 0.0 }
 0x10e   :  { %v140_v41 = vsel %vm139_vm1, %v133_v40, 0.0  ;;  %v143_v42 = vsel %vm139_vm1, 1e+30, %v133_v40 }
 0x10f   :  { %141 = vadd.xlane.f32.xlu1 %v140_v41 }
 0x113   :  { %144 = vmin.xlane.f32.xlu1 %v143_v42 }
 0x19c   :  { %v142_v43 = vpop.xlane.xlu1 %141 }
 0x19d   :  { %v146_v44 = vadd.f32 5.0, %v142_v43 }
 0x1a0   :  { %v145_v45 = vpop.xlane.xlu1 %144 }
 0x1a1   :  { %v147_v46 = vsub.f32 %v146_v44, %v145_v45 }
 0x1a3   :  { %v149_v47 = vand.u32 2147483647, %v147_v46  ;;  %v148_v58 = vmax.f32 %v147_v46, 0.0 }
 0x1a5   :  { %v150_v48 = vsub.f32 0.0, %v149_v47 }
 0x1a7   :  { %v151_v49 = vmul.f32 1.442695, %v150_v48 }
 0x1a9   :  { %285 = vpow2.f32 %v151_v49 }
 0x1b3   :  { %v286_v50 = vpop.eup %285 }
 0x1b4   :  { %v153_v51 = vadd.f32 1.0, %v286_v50  ;;  %v156_v52 = vmul.f32 -0.5, %v286_v50  ;;  %v159_v54 = vand.u32 2147483647, %v286_v50 }
 0x1b6   :  { %287 = vlog2.f32 %v153_v51  ;;  %v157_v53 = vadd.f32 1.0, %v156_v52  ;;  %vm160_vm2 = vcmp.lt.f32.partialorder %v159_v54, 0.0004427343 }
 0x1b8   :  { %v158_v57 = vmul.f32 %v286_v50, %v157_v53 }
 0x1c0   :  { %v288_v55 = vpop.eup %287 }
 0x1c1   :  { %v155_v56 = vmul.f32 0.6931472, %v288_v55 }
 0x1c3   :  { %v161_v59 = vsel %vm160_vm2, %v158_v57, %v155_v56 }
 0x1c4   :  { %v162_v60 = vadd.f32 %v161_v59, %v148_v58 }
 0x1c6   :  { %v171_v61 = vsel %vm170_vm3, %v162_v60, 0.0 }
 0x1c7   :  { %172 = vadd.xlane.f32.xlu1 %v171_v61 }
 0x254   :  { %v173_v62 = vpop.xlane.xlu1 %172 }
 0x255   :  { %v174_v63 = vrot.slane %v173_v62, 4 }
 0x257   :  { %v175_v0 = vadd.f32 %v174_v63, %v173_v62 }
 0x259   :  { %v176_v1 = vrot.slane %v175_v0, 2 }
 0x25b   :  { %v177_v2 = vadd.f32 %v176_v1, %v175_v0 }
 0x25d   :  { %v178_v3 = vrot.slane %v177_v2, 1 }
 0x25f   :  { %v179_v4 = vadd.f32 %v178_v3, %v177_v2 }
 0x261   :  { %274 = vpush %v179_v4 }
 0x292   :  { %s275_s2 = spop %274 }
 0x293   :  { %182 = sst [smem:[#allocation5]] %s275_s2 }
 0x294   :  { %320 = shalt.err (!%p317_p10)
}
 0x295   :  { %s332_s13 = smov [#allocation5]  }
 0x296   :  { %190 = dma.smem_to_hbm %s332_s13, 16, %s395_s4, [#allocation4]  }
 0x297   :  { %323 = dma.done.wait [#allocation4], 16  }
 0x298   :  { %324 = vsyncadd [#allocation4], 4294967280 }
 0x299   :  { %194 = sfence }
 0x29a   :  { %195 = vsyncpa [#allocation3], 1 }
 0x29b   :  { %196 = vsyncpa [#allocation4], 1 }

</bundles_post_ra>
